<compile_context>
chip_gen: v7x
topology: tpu7x:2x2x1
jax: 0.10.0
libtpu: 0.0.40
codegen_flags: <defaults>
</compile_context>

<pallas_src>
import numpy as np
import jax
import jax.numpy as jnp
from jax import lax
from jax.experimental import pallas as pl
from jax.experimental.pallas import tpu as pltpu


def _round_up(x, m):
    return (x + m - 1) // m * m


def _make_film_kernel(dout_axis):
    """dout_axis: which grid axis walks the out-feature tiles (static)."""

    def film_kernel(x_ref, wt_ref, b_ref, o_ref):
        # Linear on the MXU: x (TB, Din) @ prepped-W (Din, TN) -> (TB, TN), f32 acc.
        y = jnp.dot(x_ref[...], wt_ref[...], preferred_element_type=jnp.float32)
        # Folded bias row (freq*b + phase) for this output tile; the bias array
        # is VMEM-resident (constant block index), so this is a local slice,
        # not a per-step DMA.
        j = pl.program_id(dout_axis)
        y = y + b_ref[pl.ds(j, 1), :]                     # (1, TN) broadcast
        # FiLM sinusoid on the VPU/EUP; freq & phase already folded upstream.
        o_ref[...] = jnp.sin(y).astype(o_ref.dtype)

    return film_kernel


def film_layer(x, weight, bias, freq, phase_shift, *,
               tb=256, tn=256, out_dtype=jnp.float32):
    """x: [B, D_in]; weight: [D_out, D_in] (PyTorch layout); bias: [D_out];
    freq, phase_shift: [1]. Returns [B, D_out] in out_dtype (default f32;
    pass jnp.bfloat16 when the consumer tolerates it -- halves the store
    stream, which binds on v5e/v6e)."""
    f32 = jnp.float32
    B, Din = x.shape
    Dout, Din_w = weight.shape
    assert Din_w == Din, "weight must be [D_out, D_in]"

    # ---- Parameter folding + layout prep (O(Dout*Din) work; in a real model
    # do this once at init / param-update time, not per forward call). --------
    freq_eff = freq.astype(f32)[0] * 15.0 + 30.0
    phase_eff = jnp.clip(phase_shift.astype(f32)[0], -np.pi, np.pi)

    # Balanced, sublane/lane-aligned tiles (avoid e.g. padding B=300 -> 512).
    nb = pl.cdiv(B, tb)                       # batch tiles
    TB = _round_up(pl.cdiv(B, nb), 8)
    B_pad = nb * TB
    nj = pl.cdiv(Dout, tn)                    # out-feature tiles
    TN = _round_up(pl.cdiv(Dout, nj), 128)    # lane-dense output stores
    Dout_pad = nj * TN

    # x: cast/pad only if actually needed (no per-call padded copy otherwise).
    x_f = x if x.dtype == f32 else x.astype(f32)
    if B_pad != B:
        x_f = jnp.pad(x_f, ((0, B_pad - B), (0, 0)))

    # MXU-native (K, N) weight with freq folded in; bias with freq/phase folded.
    w_t = (weight.astype(f32) * freq_eff).T                   # (Din, Dout)
    b_f = bias.astype(f32) * freq_eff + phase_eff              # (Dout,)
    if Dout_pad != Dout:
        w_t = jnp.pad(w_t, ((0, 0), (0, Dout_pad - Dout)))
        b_f = jnp.pad(b_f, (0, Dout_pad - Dout))
    b_f = b_f.reshape(nj, TN)

    # ---- Grid order: put the larger operand on the SLOW axis so it is DMA'd
    # from HBM exactly once (VMEM-resident); the smaller one is re-streamed.
    if Dout_pad >= B_pad:
        grid = (nj, nb)                       # j slow (weight resident), i fast
        x_map = lambda j, i: (i, 0)
        w_map = lambda j, i: (0, j)
        o_map = lambda j, i: (i, j)
        dout_axis = 0
    else:
        grid = (nb, nj)                       # i slow (x resident), j fast
        x_map = lambda i, j: (i, 0)
        w_map = lambda i, j: (0, j)
        o_map = lambda i, j: (i, j)
        dout_axis = 1

    out = pl.pallas_call(
        _make_film_kernel(dout_axis),
        out_shape=jax.ShapeDtypeStruct((B_pad, Dout_pad), out_dtype),
        grid=grid,
        in_specs=[
            pl.BlockSpec((TB, Din), x_map),               # activation tile
            pl.BlockSpec((Din, TN), w_map),               # weight tile, (K, N)
            pl.BlockSpec((nj, TN), lambda *_: (0, 0)),    # folded bias, resident
        ],
        out_specs=pl.BlockSpec((TB, TN), o_map),
        compiler_params=pltpu.CompilerParams(
            # Both axes independent -> sharded across TCs (v7x megacore).
            dimension_semantics=("parallel", "parallel"),
            # Safe on every generation (v7x has 64 MiB physical); tiles here
            # are far smaller -- see TODO about a K axis for huge Din.
            vmem_limit_bytes=32 * 1024 * 1024,
        ),
    )(x_f, w_t, b_f)

    return out[:B, :Dout]


def _reference(x, weight, bias, freq, phase_shift):
    y = jnp.dot(x, weight.T, precision=lax.Precision.HIGHEST) + bias
    f = freq[0] * 15.0 + 30.0
    p = jnp.clip(phase_shift[0], -np.pi, np.pi)
    return jnp.sin(f * y + p)


if __name__ == "__main__":
    key = jax.random.PRNGKey(0)

    # --- Small shapes matching the module's forward (x: [b, 3]) -------------
    B, INPUT_DIM, OUTPUT_DIM = 8, 3, 32
    kx, kw, kb, kx2, kw2, kb2 = jax.random.split(key, 6)

    x = jax.random.normal(kx, (B, INPUT_DIM), dtype=jnp.float32)
    bound = 1.0 / np.sqrt(INPUT_DIM)
    weight = jax.random.uniform(kw, (OUTPUT_DIM, INPUT_DIM),
                                minval=-bound, maxval=bound, dtype=jnp.float32)
    bias = jax.random.uniform(kb, (OUTPUT_DIM,),
                              minval=-bound, maxval=bound, dtype=jnp.float32)
    freq = jnp.ones((1,), dtype=jnp.float32)          # nn.Parameter(ones([1]))
    phase_shift = jnp.zeros((1,), dtype=jnp.float32)  # nn.Parameter(zeros([1]))

    out = jax.block_until_ready(film_layer(x, weight, bias, freq, phase_shift))
    ref = _reference(x, weight, bias, freq, phase_shift)
    # freq folding reorders f32 roundings of an argument amplified by ~45, so
    # tolerance is slightly looser than the raw-linear case; sin output is in
    # [-1, 1] so 1e-4 absolute is still a strict check.
    np.testing.assert_allclose(np.asarray(out), np.asarray(ref),
                               rtol=1e-4, atol=1e-4)

    # --- Larger ragged case: exercises balanced tiling (300 -> 304, not 512),
    #     the grid / padding path, and the x-resident grid order. -------------
    B2, DIN2, DOUT2 = 300, 3, 200
    x2 = jax.random.normal(kx2, (B2, DIN2), dtype=jnp.float32)
    bound2 = 1.0 / np.sqrt(DIN2)
    w2 = jax.random.uniform(kw2, (DOUT2, DIN2),
                            minval=-bound2, maxval=bound2, dtype=jnp.float32)
    b2 = jax.random.uniform(kb2, (DOUT2,),
                            minval=-bound2, maxval=bound2, dtype=jnp.float32)
    out2 = jax.block_until_ready(film_layer(x2, w2, b2, freq, phase_shift))
    ref2 = _reference(x2, w2, b2, freq, phase_shift)
    np.testing.assert_allclose(np.asarray(out2), np.asarray(ref2),
                               rtol=2e-4, atol=2e-4)

    # --- bf16 output path (store-bound v5e/v6e recommendation) --------------
    out2_bf16 = jax.block_until_ready(
        film_layer(x2, w2, b2, freq, phase_shift, out_dtype=jnp.bfloat16))
    np.testing.assert_allclose(np.asarray(out2_bf16).astype(np.float32),
                               np.asarray(ref2), rtol=2e-2, atol=1e-2)

    print("KERNEL_OK")
</pallas_src>

<mosaic_0001>
module attributes {stable_mosaic.version = 11 : i64} {
  func.func @film_kernel(%arg0: i32, %arg1: i32, %arg2: memref<8x3xf32, #tpu.memory_space<vmem>>, %arg3: memref<3x128xf32, #tpu.memory_space<vmem>>, %arg4: memref<1x128xf32, #tpu.memory_space<vmem>>, %arg5: memref<8x128xf32, #tpu.memory_space<vmem>>) attributes {dimension_semantics = [#tpu.dimension_semantics<parallel>, #tpu.dimension_semantics<parallel>], iteration_bounds = array<i64: 1, 1>, scalar_prefetch = 0 : i64, scratch_operands = 0 : i64, tpu.core_type = #tpu.core_type<tc>, window_params = [{transform_indices = @transform_0, window_bounds = array<i64: 8, 3>}, {transform_indices = @transform_1, window_bounds = array<i64: 3, 128>}, {pipeline_mode = #tpu.pipeline_mode<synchronous>, transform_indices = @transform_2, window_bounds = array<i64: 1, 128>}, {transform_indices = @transform_3, window_bounds = array<i64: 8, 128>}]} {
    %c0 = arith.constant 0 : index
    %c0_0 = arith.constant 0 : index
    %0 = vector.load %arg2[%c0, %c0_0] : memref<8x3xf32, #tpu.memory_space<vmem>>, vector<8x3xf32>
    %c0_1 = arith.constant 0 : index
    %c0_2 = arith.constant 0 : index
    %1 = vector.load %arg3[%c0_1, %c0_2] : memref<3x128xf32, #tpu.memory_space<vmem>>, vector<3x128xf32>
    %cst = arith.constant dense<0.000000e+00> : vector<8x128xf32>
    %2 = tpu.matmul %0, %1, %cst {dimension_numbers = #tpu.dot_dimension_numbers<[1], [0], [0], [1], [0, 0, 1, 1], [], []>} : vector<8x3xf32>, vector<3x128xf32>, vector<8x128xf32> -> vector<8x128xf32>
    %3 = arith.index_cast %arg0 : i32 to index
    %c0_3 = arith.constant 0 : index
    %4 = vector.load %arg4[%3, %c0_3] : memref<1x128xf32, #tpu.memory_space<vmem>>, vector<1x128xf32>
    %5 = vector.broadcast %4 : vector<1x128xf32> to vector<8x128xf32>
    %6 = arith.addf %2, %5 : vector<8x128xf32>
    %7 = math.sin %6 : vector<8x128xf32>
    %c0_4 = arith.constant 0 : index
    %c0_5 = arith.constant 0 : index
    %8 = vector.load %arg5[%c0_4, %c0_5] : memref<8x128xf32, #tpu.memory_space<vmem>>, vector<8x128xf32>
    tpu.vector_store %arg5[%c0_4, %c0_5], %7 {strides = array<i32>} : memref<8x128xf32, #tpu.memory_space<vmem>>, vector<8x128xf32>,
    return
  }
  func.func @transform_0(%arg0: i32, %arg1: i32) -> (i32, i32) {
    %c0_i32 = arith.constant 0 : i32
    %c0_i32_0 = arith.constant 0 : i32
    return %arg1, %c0_i32 : i32, i32
  }
  func.func @transform_1(%arg0: i32, %arg1: i32) -> (i32, i32) {
    %c0_i32 = arith.constant 0 : i32
    %c0_i32_0 = arith.constant 0 : i32
    return %c0_i32, %arg0 : i32, i32
  }
  func.func @transform_2(%arg0: i32, %arg1: i32) -> (i32, i32) {
    %c0_i32 = arith.constant 0 : i32
    %c0_i32_0 = arith.constant 0 : i32
    %c0_i32_1 = arith.constant 0 : i32
    return %c0_i32, %c0_i32_0 : i32, i32
  }
  func.func @transform_3(%arg0: i32, %arg1: i32) -> (i32, i32) {
    %c0_i32 = arith.constant 0 : i32
    return %arg1, %arg0 : i32, i32
  }
}

</mosaic_0001>

<bundles_post_ra>
// kernel: tpu_custom_call.1
= control target key start
LH: loop header
LB: loop body
LE: loop exit
PB: predicated region body
PF: predicated region fallthrough
CT: control target
= control target key end

     0   :  { %vm28_vm0 = vcmask 1042432   ;;  %v276_v2 = vmov 0.0   ;;  %vm277_vm1 = vmmov 0   ;;  %vm24_vm2 = vcmask 23552   ;;  %s347_s0 = inlined_call_operand.vmem [shape: f32[8,3], index: 0, kind: input, shape index: {}]   ;;  %s348_s1 = inlined_call_operand.vmem [shape: f32[3,128], index: 1, kind: input, shape index: {}]   ;;  %s349_s2 = inlined_call_operand.vmem [shape: f32[1,128], index: 2, kind: input, shape index: {}]   ;;  %s350_s3 = inlined_call_operand.hbm [shape: f32[8,128], index: 3, kind: output, shape index: {}]  }
   0x1   :  { %v16_v0 = vld [vmem:[%s348_s1] sm:$0x7]  ;;  %230 = vmatprep.subr.mxu0 %v276_v2  ;;  %232 = vmatprep.mubr.msk.f32.mxu0 %vm277_vm1, %v276_v2 }
   0x2   :  { %v15_v1 = vld [vmem:[%s347_s0] sm:$0xff] }
   0x3   :  { %8 = vsyncpa [#allocation3], 0  ;;  %231 = vmatpush3.msk.msra.mxu0 %vm28_vm0, %v16_v0  ;;  %v221_v3 = vld [vmem:[%s349_s2] ss:$0 sm:$0xff]  ;;  %v278_v17 = vmov 683565275  }
   0x4   :  { %233 = vmatmul.mubr.msk.f32.vlgmr.msra.gmra.mrb[0].mxu0 %vm24_vm2, %v15_v1  ;;  %v279_v19 = vmov 2475754826   ;;  %v280_v22 = vmov 2131351028   ;;  %v281_v25 = vmov 2102212464  }
   0x5   :  { %v282_v28 = vmov 920167782   ;;  %v283_v31 = vmov 1326507024   ;;  %s284_s0 = smov [#allocation2]  }
   0x6   :  { %s213_s1 = sshll.u32 %s284_s0, 4  ;;  %s214_s1 = int_to_ptr.vmem [resolvable:$true] %s213_s1 }
   0x7   :  { %s252_s2 = scalar_lea.vmem %s214_s1, 128  ;;  %p257_p1 = scmp.lt.s32.totalorder %s214_s1, %s214_s1 }
   0x8   :  { %p253_p0 = scmp.ne.s32.totalorder %s214_s1, %s252_s2  ;;  %p258_p2 = scmp.lt.s32.totalorder %s252_s2, %s252_s2 }
   0xa   :  { %p259_p3 = por %p258_p2, %p257_p1 }
   0xc   :  { %p260_p4 = pnand %p259_p3, %p253_p0 }
  0xd7   :  { %v98_v4 = vpop.f32.mrb[0].mxu0 }
  0xd8   :  { %v314_v5 = vadd.f32 %v221_v3, %v98_v4  ;;  %v234_v6 = vpop.f32.mrb[1].mxu0 }
  0xda   :  { %v105_v7 = vand.u32 2139095040, %v314_v5  ;;  %v102_v11 = vand.u32 2147483647, %v314_v5  ;;  %vm104_vm10 = vcmp.lt.s32.totalorder %v314_v5, 0  ;;  %vm194_vm15 = vweird.f32 %v314_v5 }
  0xdc   :  { %v106_v8 = vshrl.u32 %v105_v7, 23  ;;  %v109_v14 = vand.u32 8388607, %v102_v11  ;;  %vm103_vm11 = vcmp.le.f32.partialorder %v102_v11, 0.7853982 }
  0xde   :  { %v224_v9 = vadd.s32 4294967169, %v106_v8  ;;  %v110_v33 = vor.u32 8388608, %v109_v14 }
  0xe0   :  { %v112_v10 = vadd.s32 1, %v224_v9  ;;  %v150_v47 = vshll.u32 %v110_v33, 8 }
  0xe2   :  { %vm113_vm3 = vcmp.gt.s32.totalorder %v112_v10, 0 }
  0xe3   :  { %v114_v12 = vsel %vm113_vm3, %v112_v10, 0 }
  0xe4   :  { %v116_v13 = vand.u32 31, %v114_v12  ;;  %v115_v16 = vshrl.u32 %v114_v12, 5 }
  0xe6   :  { %v117_v15 = vsub.s32 32, %v116_v13  ;;  %v119_v18 = vshll.u32 %v278_v17, %v116_v13  ;;  %v122_v20 = vshll.u32 %v279_v19, %v116_v13  ;;  %v125_v24 = vshll.u32 %v280_v22, %v116_v13 }
  0xe7   :  { %v128_v27 = vshll.u32 %v281_v25, %v116_v13  ;;  %v131_v30 = vshll.u32 %v282_v28, %v116_v13  ;;  %vm134_vm4 = vcmp.lt.s32.totalorder %v115_v16, 1  ;;  %vm137_vm5 = vcmp.lt.s32.totalorder %v115_v16, 4 }
  0xe8   :  { %v120_v21 = vshrl.u32 %v279_v19, %v117_v15  ;;  %v123_v23 = vshrl.u32 %v280_v22, %v117_v15  ;;  %v126_v26 = vshrl.u32 %v281_v25, %v117_v15  ;;  %v129_v29 = vshrl.u32 %v282_v28, %v117_v15 }
  0xe9   :  { %v132_v32 = vshrl.u32 %v283_v31, %v117_v15  ;;  %v118_v42 = vshrl.u32 %v278_v17, %v117_v15  ;;  %vm136_vm6 = vcmp.lt.s32.totalorder %v115_v16, 3  ;;  %vm135_vm7 = vcmp.lt.s32.totalorder %v115_v16, 2 }
  0xea   :  { %v121_v34 = vor.u32 %v120_v21, %v119_v18  ;;  %v124_v35 = vor.u32 %v123_v23, %v122_v20  ;;  %v127_v36 = vor.u32 %v126_v26, %v125_v24  ;;  %v130_v37 = vor.u32 %v129_v29, %v128_v27 }
  0xeb   :  { %v133_v38 = vor.u32 %v132_v32, %v131_v30 }
  0xec   :  { %v139_v39 = vsel %vm137_vm5, %v127_v36, 2102212464  ;;  %v142_v40 = vsel %vm134_vm4, %v121_v34, %v124_v35  ;;  %v146_v41 = vsel %vm134_vm4, %v124_v35, %v127_v36  ;;  %v143_v43 = vsel %vm137_vm5, %v130_v37, 920167782 }
  0xed   :  { %v147_v44 = vsel %vm137_vm5, %v133_v38, 1326507024  ;;  %v144_v45 = vsel %vm136_vm6, %v127_v36, %v143_v43  ;;  %v138_v48 = vsel %vm134_vm4, %v118_v42, %v121_v34  ;;  %v140_v49 = vsel %vm136_vm6, %v124_v35, %v139_v39 }
  0xee   :  { %v148_v46 = vsel %vm136_vm6, %v130_v37, %v147_v44  ;;  %v145_v50 = vsel %vm135_vm7, %v142_v40, %v144_v45  ;;  %v141_v56 = vsel %vm135_vm7, %v138_v48, %v140_v49 }
  0xef   :  { %v149_v51 = vsel %vm135_vm7, %v146_v41, %v148_v46  ;;  %v323_v54 = vmul.u32.u64.low %v150_v47, %v145_v50  ;;  %v324_v55 = vmul.u32.u64.high %v150_v47, %v145_v50, %v323_v54  ;;  %v157_v58 = vmul.u32 %v150_v47, %v141_v56 }
  0xf0   :  { %v320_v52 = vmul.u32.u64.low %v150_v47, %v149_v51  ;;  %v321_v53 = vmul.u32.u64.high %v150_v47, %v149_v51, %v320_v52 }
  0xf1   :  { %v160_v57 = vadd.s32 1, %v324_v55 }
  0xf2   :  { %vm159_vm8 = vc.u32 %v321_v53, %v323_v54  ;;  %v158_v7 = vadd.s32 %v323_v54, %v321_v53 }
  0xf3   :  { %v161_v59 = vsel %vm159_vm8, %v160_v57, %v324_v55 }
  0xf4   :  { %v162_v60 = vadd.s32 %v161_v59, %v157_v58 }
  0xf6   :  { %v163_v61 = vadd.s32 536870912, %v162_v60 }
  0xf8   :  { %v164_v62 = vshrl.u32 %v163_v61, 30 }
  0xfa   :  { %v165_v63 = vshll.u32 %v164_v62, 30  ;;  %v188_v20 = vsub.s32 4, %v164_v62 }
  0xfc   :  { %v166_v0 = vsub.s32 %v162_v60, %v165_v63  ;;  %v189_v23 = vsel %vm104_vm10, %v188_v20, %v164_v62 }
  0xfd   :  { %v191_v25 = vsel %vm103_vm11, 0, %v189_v23 }
  0xfe   :  { %v168_v1 = vsub.s32 0, %v166_v0  ;;  %v195_v26 = vadd.s32 3, %v191_v25 }
 0x100   :  { %v225_v2 = vmin.u32 %v168_v1, %v166_v0  ;;  %v196_v27 = vand.u32 3, %v195_v26 }
 0x102   :  { %v170_v3 = vclz %v225_v2  ;;  %vm201_vm12 = vcmp.eq.s32.totalorder %v196_v27, 2  ;;  %vm198_vm13 = vcmp.eq.s32.totalorder %v196_v27, 0  ;;  %vm197_vm14 = vcmp.lt.s32.totalorder %v196_v27, 2 }
 0x104   :  { %v226_v4 = vadd.s32 4294967294, %v170_v3 }
 0x106   :  { %vm227_vm9 = vcmp.lt.s32.totalorder %v226_v4, 0 }
 0x107   :  { %v173_v6 = vsel %vm227_vm9, 0, %v226_v4 }
 0x108   :  { %v174_v8 = vsub.s32 32, %v173_v6  ;;  %v178_v9 = vsub.s32 4294967266, %v173_v6  ;;  %v175_v10 = vshll.u32 %v166_v0, %v173_v6 }
 0x10a   :  { %v176_v12 = vshrl.u32 %v158_v7, %v174_v8  ;;  %v179_v13 = vadd.s32 127, %v178_v9 }
 0x10c   :  { %v177_v14 = vor.u32 %v176_v12, %v175_v10  ;;  %v180_v15 = vshll.u32 %v179_v13, 23 }
 0x10e   :  { %v181_v16 = vor.u32 4788187, %v180_v15  ;;  %v184_v18 = vcvt.s32.f32 %v177_v14 }
 0x110   :  { %v182_v17 = vand.u32 2147483647, %v181_v16 }
 0x112   :  { %v185_v19 = vmul.f32 %v184_v18, %v182_v17 }
 0x114   :  { %v186_v21 = vxor.u32 2147483648, %v185_v19 }
 0x116   :  { %v187_v22 = vsel %vm104_vm10, %v186_v21, %v185_v19 }
 0x117   :  { %v190_v24 = vsel %vm103_vm11, %v314_v5, %v187_v22 }
 0x118   :  { %248 = vcosq.f32 %v190_v24 }
 0x119   :  { %250 = vsinq.f32 %v190_v24 }
 0x122   :  { %v249_v28 = vpop.eup %248 }
 0x123   :  { %v251_v29 = vpop.eup %250  ;;  %v202_v30 = vxor.u32 2147483648, %v249_v28 }
 0x124   :  { %v199_v31 = vxor.u32 2147483648, %v251_v29 }
 0x125   :  { %v203_v32 = vsel %vm201_vm12, %v202_v30, %v251_v29 }
 0x126   :  { %v200_v33 = vsel %vm198_vm13, %v249_v28, %v199_v31 }
 0x127   :  { %v204_v11 = vsel %vm197_vm14, %v200_v33, %v203_v32 }
 0x128   :  { %v205_v34 = vsel %vm194_vm15, nan, %v204_v11 }
 0x129   :  { %206 = vst [vmem:[#allocation2] sm:$0xff] %v205_v34 }
 0x12a   :  { %263 = shalt.err (!%p260_p4)
}
 0x12b   :  { %s264_s20 = scalar_lea.hbm %s350_s3, 128 }
 0x12c   :  { %p265_p5 = scmp.ne.s32.totalorder %s350_s3, %s264_s20  ;;  %p268_p6 = scmp.lt.u32.totalorder %s264_s20, %s350_s3 }
 0x12e   :  { %p270_p7 = pnand %p268_p6, %p265_p5 }
 0x130   :  { %273 = shalt.err (!%p270_p7)
}
 0x131   :  { %216 = dma.vmem_to_hbm [thread:$0]  %s214_s1, 128, %s350_s3, [#allocation3]  }
 0x132   :  { %274 = dma.done.wait [#allocation3], 128  }
 0x133   :  { %275 = vsyncadd [#allocation3], 4294967168 }
 0x134   :  { %220 = vsyncpa [#allocation3], 1 }

</bundles_post_ra>
